<compile_context>
chip_gen: v6e
topology: v6e:2x2x1
jax: 0.10.0
libtpu: 0.0.40
codegen_flags: <defaults>
</compile_context>

<pallas_src>
import jax
import jax.numpy as jnp
from jax.experimental import pallas as pl
from jax.experimental.pallas import tpu as pltpu

B = 2          # batch (number of protein / drug pairs)
L = 16         # protein max sequence length
D = 32         # pro_hid_dim (small stand-in for 768)
A = 8          # atoms per drug
F_ATOM = 16    # input_feat_dim
FP = 32        # fingerprint_dim (== drug_hid_dim)
OUT = 1        # task == 'PDBBind' -> nn.Linear(pro_hid_dim, 1)
NEG_BIG = -1e10


# ------------------------- fused MASSAPLI forward kernel ----------------------
# One invocation does:
#   1) MASSA masked-norm softmax weighting + mean pool over L  -> protein_emb (B,D)
#   2) drug (Fingerprint stand-in) atom MLP + masked mean pool -> drug_emb   (B,FP)
#   3) single-token cross-fusion (softmax over 1 key == 1, so the attention
#      collapses to the fused value/output projection W_vo), residual add,
#      fc2 = ReLU -> Dropout(eval=id) -> Linear(D, OUT)        -> predict    (B,OUT)
def massapli_kernel(feat_ref, pmask_ref, atoms_ref, amask_ref, pool_ref,
                    w_atom_ref, b_atom_ref, w_vo_ref, wfc_ref, bfc_ref,
                    out_ref):
    # ---- protein MASSA pool -------------------------------------------------
    feat = feat_ref[...]                                   # (B, L, D)
    pmask = pmask_ref[...]                                 # (B, L), exact 0/1
    norm = jnp.sqrt(jnp.sum(feat * feat, axis=-1))         # (B, L)  ||feat||_2
    norm = jnp.where(pmask == 0.0, NEG_BIG, norm)          # masked_fill
    m = jnp.max(norm, axis=-1, keepdims=True)
    e = jnp.exp(norm - m)
    w = e / jnp.sum(e, axis=-1, keepdims=True)             # softmax over L
    protein_emb = jnp.mean(feat * w[:, :, None], axis=1)   # (B, D)  (.mean(dim=1))

    # ---- drug embedding (Fingerprint stand-in) ------------------------------
    atoms = atoms_ref[...]                                 # (B*A, F_ATOM)
    amask = amask_ref[...]                                 # (B*A, 1)
    h = jnp.dot(atoms, w_atom_ref[...],
                preferred_element_type=jnp.float32)        # (B*A, FP)
    h = jnp.maximum(h + b_atom_ref[...], 0.0)              # ReLU
    pool = pool_ref[...]                                   # (B, B*A) block-diag 1s
    drug_sum = jnp.dot(pool, h * amask,
                       preferred_element_type=jnp.float32)  # (B, FP)
    counts = jnp.dot(pool, amask,
                     preferred_element_type=jnp.float32)    # (B, 1)
    drug_emb = drug_sum / jnp.maximum(counts, 1.0)          # masked mean, /0 guard

    # ---- cross-fusion (single token) + fc2 head -----------------------------
    attn = jnp.dot(drug_emb, w_vo_ref[...],
                   preferred_element_type=jnp.float32)      # (B, D)  == (drug@wv)@wo
    fused = protein_emb + attn                              # residual fusion
    hh = jnp.maximum(fused, 0.0)                            # ReLU (dropout = id, eval)
    pred = jnp.dot(hh, wfc_ref[...],
                   preferred_element_type=jnp.float32) + bfc_ref[...]
    out_ref[...] = pred                                     # (B, OUT), single store


def fused_forward(seq_feat, pmask, atoms2d, amask2d, pool,
                  w_atom, b_atom, w_vo, wfc, bfc):
    vmem = pl.BlockSpec(memory_space=pltpu.MemorySpace.VMEM)
    return pl.pallas_call(
        massapli_kernel,
        out_shape=jax.ShapeDtypeStruct((B, OUT), jnp.float32),
        in_specs=[vmem] * 10,
        out_specs=vmem,
    )(seq_feat, pmask, atoms2d, amask2d, pool, w_atom, b_atom, w_vo, wfc, bfc)


# ---------------------------------- glue --------------------------------------
def make_masks(proteins_num, max_len):
    # JAX equivalent of MASSA.make_masks (the python loop is just mask building)
    idx = jnp.arange(max_len, dtype=jnp.int32)[None, :]
    return (idx < proteins_num[:, None]).astype(jnp.float32)        # (B, L)


def massapli_forward(protein_data, drug_data, params):
    pro_ids, seq_feat, proteins_num = protein_data
    atom_list, bond_list, atom_degree_list, bond_degree_list, atom_mask = drug_data
    del pro_ids, bond_list, atom_degree_list, bond_degree_list  # unused (see TODOs)

    pmask = make_masks(proteins_num, L)                             # (B, L)

    # fold batch into the sublane axis for the atom MLP
    atoms2d = atom_list.reshape(B * A, F_ATOM)                      # (B*A, F_ATOM)
    amask2d = atom_mask.reshape(B * A, 1)                           # (B*A, 1)
    # per-batch pooling matrix: pool[b, b*A:(b+1)*A] = 1
    pool = (jnp.arange(B * A, dtype=jnp.int32)[None, :] // A
            == jnp.arange(B, dtype=jnp.int32)[:, None]).astype(jnp.float32)

    # algebraic fusion of the value & output projections (no nonlinearity between)
    w_vo = jnp.dot(params["wv"], params["wo"],
                   preferred_element_type=jnp.float32)              # (FP, D)

    predict = fused_forward(seq_feat, pmask, atoms2d, amask2d, pool,
                            params["w_atom"], params["b_atom"], w_vo,
                            params["wfc"], params["bfc"])           # (B, OUT)
    return predict


if __name__ == "__main__":
    # deterministic example inputs
    k_in = jax.random.PRNGKey(0)
    k1, k2 = jax.random.split(k_in, 2)
    seq_feat = jax.random.normal(k1, (B, L, D), dtype=jnp.float32)   # encoder repr stand-in
    proteins_num = jnp.array([12, 16], dtype=jnp.int32)
    pro_ids = jnp.arange(B, dtype=jnp.int32)

    atom_list = jax.random.normal(k2, (B, A, F_ATOM), dtype=jnp.float32)
    bond_list = jnp.zeros((B, A, F_ATOM), dtype=jnp.float32)          # unused stand-ins
    atom_degree_list = jnp.zeros((B, A), dtype=jnp.int32)
    bond_degree_list = jnp.zeros((B, A), dtype=jnp.int32)
    atom_mask = (jnp.arange(A)[None, :] <
                 jnp.array([6, 8])[:, None]).astype(jnp.float32)      # (B, A)

    # deterministic parameter init (synthetic, no checkpoint)
    pk = jax.random.split(jax.random.PRNGKey(1), 4)
    params = {
        "w_atom": 0.1 * jax.random.normal(pk[0], (F_ATOM, FP), dtype=jnp.float32),
        "b_atom": jnp.zeros((1, FP), dtype=jnp.float32),
        "wv": 0.1 * jax.random.normal(pk[1], (FP, D), dtype=jnp.float32),
        "wo": 0.1 * jax.random.normal(pk[2], (D, D), dtype=jnp.float32),
        "wfc": 0.1 * jax.random.normal(pk[3], (D, OUT), dtype=jnp.float32),
        "bfc": jnp.zeros((1, OUT), dtype=jnp.float32),
    }

    protein_data = (pro_ids, seq_feat, proteins_num)
    drug_data = (atom_list, bond_list, atom_degree_list, bond_degree_list, atom_mask)

    predict = massapli_forward(protein_data, drug_data, params)
    jax.block_until_ready(predict)
    assert predict.shape == (B, OUT)
    print("KERNEL_OK")
</pallas_src>

<mosaic_0001>
module attributes {stable_mosaic.version = 11 : i64} {
  func.func @massapli_kernel(%arg0: memref<2x16x32xf32, #tpu.memory_space<vmem>>, %arg1: memref<2x16xf32, #tpu.memory_space<vmem>>, %arg2: memref<16x16xf32, #tpu.memory_space<vmem>>, %arg3: memref<16x1xf32, #tpu.memory_space<vmem>>, %arg4: memref<2x16xf32, #tpu.memory_space<vmem>>, %arg5: memref<16x32xf32, #tpu.memory_space<vmem>>, %arg6: memref<1x32xf32, #tpu.memory_space<vmem>>, %arg7: memref<32x32xf32, #tpu.memory_space<vmem>>, %arg8: memref<32x1xf32, #tpu.memory_space<vmem>>, %arg9: memref<1x1xf32, #tpu.memory_space<vmem>>, %arg10: memref<2x1xf32, #tpu.memory_space<vmem>>) attributes {dimension_semantics = [], scalar_prefetch = 0 : i64, scratch_operands = 0 : i64, tpu.core_type = #tpu.core_type<tc>} {
    %c0 = arith.constant 0 : index
    %c0_0 = arith.constant 0 : index
    %c0_1 = arith.constant 0 : index
    %0 = vector.load %arg0[%c0, %c0_0, %c0_1] : memref<2x16x32xf32, #tpu.memory_space<vmem>>, vector<2x16x32xf32>
    %c0_2 = arith.constant 0 : index
    %c0_3 = arith.constant 0 : index
    %1 = vector.load %arg1[%c0_2, %c0_3] : memref<2x16xf32, #tpu.memory_space<vmem>>, vector<2x16xf32>
    %2 = arith.mulf %0, %0 : vector<2x16x32xf32>
    %cst = arith.constant dense<0.000000e+00> : vector<2x16xf32>
    %3 = vector.multi_reduction <add>, %2, %cst [2] : vector<2x16x32xf32> to vector<2x16xf32>
    %4 = math.sqrt %3 : vector<2x16xf32>
    %cst_4 = arith.constant 0.000000e+00 : f32
    %5 = vector.broadcast %cst_4 : f32 to vector<2x16xf32>
    %6 = arith.cmpf oeq, %1, %5 : vector<2x16xf32>
    %cst_5 = arith.constant -1.000000e+10 : f32
    %7 = vector.broadcast %cst_5 : f32 to vector<2x16xf32>
    %8 = arith.select %6, %7, %4 : vector<2x16xi1>, vector<2x16xf32>
    %cst_6 = arith.constant dense<0xFF800000> : vector<2xf32>
    %9 = vector.multi_reduction <maximumf>, %8, %cst_6 [1] : vector<2x16xf32> to vector<2xf32>
    %10 = vector.shape_cast %9 : vector<2xf32> to vector<2x1xf32>
    %11 = vector.broadcast %10 : vector<2x1xf32> to vector<2x16xf32>
    %12 = arith.subf %8, %11 : vector<2x16xf32>
    %13 = math.exp %12 : vector<2x16xf32>
    %cst_7 = arith.constant dense<0.000000e+00> : vector<2xf32>
    %14 = vector.multi_reduction <add>, %13, %cst_7 [1] : vector<2x16xf32> to vector<2xf32>
    %15 = vector.shape_cast %14 : vector<2xf32> to vector<2x1xf32>
    %16 = vector.broadcast %15 : vector<2x1xf32> to vector<2x16xf32>
    %17 = arith.divf %13, %16 : vector<2x16xf32>
    %18 = vector.shape_cast %17 : vector<2x16xf32> to vector<2x16x1xf32>
    %19 = vector.broadcast %18 : vector<2x16x1xf32> to vector<2x16x32xf32>
    %20 = arith.mulf %0, %19 : vector<2x16x32xf32>
    %cst_8 = arith.constant dense<0.000000e+00> : vector<2x32xf32>
    %21 = vector.multi_reduction <add>, %20, %cst_8 [1] : vector<2x16x32xf32> to vector<2x32xf32>
    %cst_9 = arith.constant 1.600000e+01 : f32
    %22 = vector.broadcast %cst_9 : f32 to vector<2x32xf32>
    %23 = arith.divf %21, %22 : vector<2x32xf32>
    %c0_10 = arith.constant 0 : index
    %c0_11 = arith.constant 0 : index
    %24 = vector.load %arg2[%c0_10, %c0_11] : memref<16x16xf32, #tpu.memory_space<vmem>>, vector<16x16xf32>
    %c0_12 = arith.constant 0 : index
    %c0_13 = arith.constant 0 : index
    %25 = vector.load %arg3[%c0_12, %c0_13] : memref<16x1xf32, #tpu.memory_space<vmem>>, vector<16x1xf32>
    %c0_14 = arith.constant 0 : index
    %c0_15 = arith.constant 0 : index
    %26 = vector.load %arg5[%c0_14, %c0_15] : memref<16x32xf32, #tpu.memory_space<vmem>>, vector<16x32xf32>
    %cst_16 = arith.constant dense<0.000000e+00> : vector<16x32xf32>
    %27 = tpu.matmul %24, %26, %cst_16 {dimension_numbers = #tpu.dot_dimension_numbers<[1], [0], [0], [1], [0, 0, 1, 1], [], []>} : vector<16x16xf32>, vector<16x32xf32>, vector<16x32xf32> -> vector<16x32xf32>
    %c0_17 = arith.constant 0 : index
    %c0_18 = arith.constant 0 : index
    %28 = vector.load %arg6[%c0_17, %c0_18] : memref<1x32xf32, #tpu.memory_space<vmem>>, vector<1x32xf32>
    %29 = vector.broadcast %28 : vector<1x32xf32> to vector<16x32xf32>
    %30 = arith.addf %27, %29 : vector<16x32xf32>
    %cst_19 = arith.constant 0.000000e+00 : f32
    %31 = vector.broadcast %cst_19 : f32 to vector<16x32xf32>
    %32 = arith.maximumf %30, %31 : vector<16x32xf32>
    %c0_20 = arith.constant 0 : index
    %c0_21 = arith.constant 0 : index
    %33 = vector.load %arg4[%c0_20, %c0_21] : memref<2x16xf32, #tpu.memory_space<vmem>>, vector<2x16xf32>
    %34 = vector.broadcast %25 : vector<16x1xf32> to vector<16x32xf32>
    %35 = arith.mulf %32, %34 : vector<16x32xf32>
    %cst_22 = arith.constant dense<0.000000e+00> : vector<2x32xf32>
    %36 = tpu.matmul %33, %35, %cst_22 {dimension_numbers = #tpu.dot_dimension_numbers<[1], [0], [0], [1], [0, 0, 1, 1], [], []>} : vector<2x16xf32>, vector<16x32xf32>, vector<2x32xf32> -> vector<2x32xf32>
    %cst_23 = arith.constant dense<0.000000e+00> : vector<2x1xf32>
    %37 = tpu.matmul %33, %25, %cst_23 {dimension_numbers = #tpu.dot_dimension_numbers<[1], [0], [0], [1], [0, 0, 1, 1], [], []>} : vector<2x16xf32>, vector<16x1xf32>, vector<2x1xf32> -> vector<2x1xf32>
    %cst_24 = arith.constant 1.000000e+00 : f32
    %38 = vector.broadcast %cst_24 : f32 to vector<2x1xf32>
    %39 = arith.maximumf %37, %38 : vector<2x1xf32>
    %40 = vector.broadcast %39 : vector<2x1xf32> to vector<2x32xf32>
    %41 = arith.divf %36, %40 : vector<2x32xf32>
    %c0_25 = arith.constant 0 : index
    %c0_26 = arith.constant 0 : index
    %42 = vector.load %arg7[%c0_25, %c0_26] : memref<32x32xf32, #tpu.memory_space<vmem>>, vector<32x32xf32>
    %cst_27 = arith.constant dense<0.000000e+00> : vector<2x32xf32>
    %43 = tpu.matmul %41, %42, %cst_27 {dimension_numbers = #tpu.dot_dimension_numbers<[1], [0], [0], [1], [0, 0, 1, 1], [], []>} : vector<2x32xf32>, vector<32x32xf32>, vector<2x32xf32> -> vector<2x32xf32>
    %44 = arith.addf %23, %43 : vector<2x32xf32>
    %cst_28 = arith.constant 0.000000e+00 : f32
    %45 = vector.broadcast %cst_28 : f32 to vector<2x32xf32>
    %46 = arith.maximumf %44, %45 : vector<2x32xf32>
    %c0_29 = arith.constant 0 : index
    %c0_30 = arith.constant 0 : index
    %47 = vector.load %arg8[%c0_29, %c0_30] : memref<32x1xf32, #tpu.memory_space<vmem>>, vector<32x1xf32>
    %cst_31 = arith.constant dense<0.000000e+00> : vector<2x1xf32>
    %48 = tpu.matmul %46, %47, %cst_31 {dimension_numbers = #tpu.dot_dimension_numbers<[1], [0], [0], [1], [0, 0, 1, 1], [], []>} : vector<2x32xf32>, vector<32x1xf32>, vector<2x1xf32> -> vector<2x1xf32>
    %c0_32 = arith.constant 0 : index
    %c0_33 = arith.constant 0 : index
    %49 = vector.load %arg9[%c0_32, %c0_33] : memref<1x1xf32, #tpu.memory_space<vmem>>, vector<1x1xf32>
    %50 = vector.broadcast %49 : vector<1x1xf32> to vector<2x1xf32>
    %51 = arith.addf %48, %50 : vector<2x1xf32>
    %c0_34 = arith.constant 0 : index
    %c0_35 = arith.constant 0 : index
    %52 = vector.load %arg10[%c0_34, %c0_35] : memref<2x1xf32, #tpu.memory_space<vmem>>, vector<2x1xf32>
    tpu.vector_store %arg10[%c0_34, %c0_35], %51 {strides = array<i32>} : memref<2x1xf32, #tpu.memory_space<vmem>>, vector<2x1xf32>,
    return
  }
}

</mosaic_0001>

<bundles_post_ra>
// kernel: tpu_custom_call.1
= control target key start
LH: loop header
LB: loop body
LE: loop exit
PB: predicated region body
PF: predicated region fallthrough
CT: control target
= control target key end

     0   :  { %s1076_s0 = inlined_call_operand.vmem [shape: f32[2,16,32], index: 0, kind: input, shape index: {}]   ;;  %s1077_s1 = inlined_call_operand.hbm [shape: f32[2,16], index: 1, kind: input, shape index: {}]   ;;  %s1078_s2 = inlined_call_operand.hbm [shape: f32[16,16], index: 2, kind: input, shape index: {}]   ;;  %s1079_s3 = inlined_call_operand.vmem [shape: f32[16,1], index: 3, kind: input, shape index: {}]   ;;  %s1080_s4 = inlined_call_operand.hbm [shape: f32[2,16], index: 4, kind: input, shape index: {}]   ;;  %s1081_s5 = inlined_call_operand.hbm [shape: f32[16,32], index: 5, kind: input, shape index: {}]   ;;  %s1082_s6 = inlined_call_operand.hbm [shape: f32[1,32], index: 6, kind: input, shape index: {}]   ;;  %s1083_s7 = inlined_call_operand.vmem [shape: f32[32,32], index: 7, kind: input, shape index: {}]   ;;  %s1084_s8 = inlined_call_operand.vmem [shape: f32[32,1], index: 8, kind: input, shape index: {}]   ;;  %s1085_s9 = inlined_call_operand.<no memory space> [shape: f32[1,1], index: 9, kind: input, shape index: {}]   ;;  %s1086_s10 = inlined_call_operand.vmem [shape: f32[2,1], index: 10, kind: output, shape index: {}]  }
   0x1   :  { %v15_v0 = vstv %s1085_s9 }
   0x2   :  { %16 = vst [vmem:[#allocation2] sm:$0x1] %v15_v0 }
   0x3   :  { %17 = vsyncpa [#allocation4], 0 }
   0x4   :  { %18 = vsyncpa [#allocation6], 0 }
   0x5   :  { %19 = vsyncpa [#allocation9], 0  ;;  %s884_s15 = smov [#allocation5]  }
   0x6   :  { %s37_s16 = sshll.u32 %s884_s15, 4  ;;  %s38_s16 = int_to_ptr.vmem [resolvable:$true] %s37_s16 }
   0x7   :  { %s786_s17 = scalar_lea.vmem %s38_s16, 256  ;;  %p791_p1 = scmp.lt.s32.totalorder %s38_s16, %s38_s16 }
   0x8   :  { %p787_p0 = scmp.ne.s32.totalorder %s38_s16, %s786_s17  ;;  %p792_p2 = scmp.lt.s32.totalorder %s786_s17, %s786_s17 }
   0xa   :  { %p793_p3 = por %p792_p2, %p791_p1 }
   0xc   :  { %p794_p4 = pnand %p793_p3, %p787_p0 }
   0xe   :  { %797 = shalt.err (!%p794_p4)
}
   0xf   :  { %s885_s18 = smov 128   ;;  %s886_s19 = smov 8  }
  0x10   :  { %43 = dma.hbm_to_vmem [thread:$0]  %s1078_s2, 256, %s38_s16, [#allocation6], %s885_s18, %s885_s18, %s886_s19  }
  0x11   :  { %s887_s9 = smov [#allocation8]   ;;  %s888_s23 = smov [#allocation3]  }
  0x12   :  { %s61_s22 = sshll.u32 %s887_s9, 4  ;;  %s28_s24 = sshll.u32 %s888_s23, 4  ;;  %s62_s22 = int_to_ptr.vmem [resolvable:$true] %s61_s22  ;;  %s29_s24 = int_to_ptr.vmem [resolvable:$true] %s28_s24 }
  0x13   :  { %s806_s25 = scalar_lea.vmem %s62_s22, 256  ;;  %p811_p6 = scmp.lt.s32.totalorder %s62_s22, %s62_s22 }
  0x14   :  { %p807_p5 = scmp.ne.s32.totalorder %s62_s22, %s806_s25  ;;  %p812_p7 = scmp.lt.s32.totalorder %s806_s25, %s806_s25 }
  0x16   :  { %p813_p8 = por %p812_p7, %p811_p6 }
  0x18   :  { %p814_p9 = pnand %p813_p8, %p807_p5 }
  0x1a   :  { %817 = shalt.err (!%p814_p9)
}
  0x1b   :  { %67 = dma.hbm_to_vmem [thread:$0]  %s1081_s5, 256, %s62_s22, [#allocation9], %s885_s18, %s885_s18, %s886_s19  }
  0x1c   :  { %s826_s28 = scalar_lea.vmem %s29_s24, 32  ;;  %p831_p11 = scmp.lt.s32.totalorder %s29_s24, %s29_s24 }
  0x1d   :  { %p827_p10 = scmp.ne.s32.totalorder %s29_s24, %s826_s28  ;;  %p832_p12 = scmp.lt.s32.totalorder %s826_s28, %s826_s28 }
  0x1f   :  { %p833_p13 = por %p832_p12, %p831_p11 }
  0x21   :  { %p834_p0 = pnand %p833_p13, %p827_p10 }
  0x23   :  { %837 = shalt.err (!%p834_p0)
}
  0x24   :  { %31 = dma.hbm_to_vmem [thread:$0]  %s1077_s1, 32, %s29_s24, [#allocation4]  }
  0x25   :  { %s889_s30 = smov [#allocation7]   ;;  %s890_s12 = smov [#allocation10]  }
  0x26   :  { %s52_s11 = sshll.u32 %s889_s30, 4  ;;  %s74_s13 = sshll.u32 %s890_s12, 4  ;;  %s53_s11 = int_to_ptr.vmem [resolvable:$true] %s52_s11  ;;  %s75_s13 = int_to_ptr.vmem [resolvable:$true] %s74_s13 }
  0x27   :  { %s846_s14 = scalar_lea.vmem %s53_s11, 32  ;;  %p851_p2 = scmp.lt.s32.totalorder %s53_s11, %s53_s11 }
  0x28   :  { %p847_p1 = scmp.ne.s32.totalorder %s53_s11, %s846_s14  ;;  %p852_p3 = scmp.lt.s32.totalorder %s846_s14, %s846_s14 }
  0x2a   :  { %p853_p4 = por %p852_p3, %p851_p2 }
  0x2c   :  { %p854_p5 = pnand %p853_p4, %p847_p1 }
  0x2e   :  { %857 = shalt.err (!%p854_p5)
}
  0x2f   :  { %55 = dma.hbm_to_vmem [thread:$0]  %s1080_s4, 32, %s53_s11, [#allocation6]  }
  0x30   :  { %s866_s16 = scalar_lea.vmem %s75_s13, 16  ;;  %s870_s1 = scalar_lea.vmem %s75_s13, 32 }
  0x31   :  { %p867_p6 = scmp.ne.s32.totalorder %s75_s13, %s866_s16  ;;  %p871_p7 = scmp.lt.s32.totalorder %s75_s13, %s75_s13 }
  0x32   :  { %p872_p8 = scmp.lt.s32.totalorder %s870_s1, %s866_s16 }
  0x34   :  { %p873_p9 = por %p872_p8, %p871_p7 }
  0x36   :  { %p874_p10 = pnand %p873_p9, %p867_p6 }
  0x38   :  { %877 = shalt.err (!%p874_p10)
}
  0x39   :  { %77 = dma.hbm_to_vmem [thread:$0]  %s1082_s6, 16, %s75_s13, [#allocation9]  }
  0x3a   :  { %878 = dma.done.wait [#allocation4], 32  }
  0x3b   :  { %879 = vsyncadd [#allocation4], 4294967264 }
  0x3c   :  { %880 = dma.done.wait [#allocation6], 288  }
  0x3d   :  { %881 = vsyncadd [#allocation6], 4294967008 }
  0x3e   :  { %882 = dma.done.wait [#allocation9], 272  }
  0x3f   :  { %883 = vsyncadd [#allocation9], 4294967024  ;;  %v891_v1 = vmov 0   ;;  %v892_v2 = vmov 0.0   ;;  %vm893_vm0 = vmmov 0   ;;  %vm252_vm1 = vcmask 130048  }
  0x40   :  { %762 = vset.pattern.permute.xlu0 %v891_v1  ;;  %716 = vmatprep.subr.mxu1 %v892_v2  ;;  %v244_v3 = vld [vmem:[#allocation8 + $0x8] sm:$0xff]  ;;  %v243_v4 = vld [vmem:[#allocation8] sm:$0xff]  ;;  %v242_v6 = vld [vmem:[%s1079_s3 + $0x8] sm:$0xff]  ;;  %vm108_vm2 = vcmask 261120   ;;  %v154_v40 = vlaneseq  ;;  %vm165_vm11 = vcmask 130112   ;;  %vm176_vm12 = vcmask 1041409  }
  0x41   :  { %763 = vset.pattern.permute.xlu1 %v891_v1  ;;  %720 = vmatprep.mubr.msk.f32.mxu1 %vm893_vm0, %v892_v2  ;;  %v239_v5 = vld [vmem:[#allocation5] sm:$0xff]  ;;  %v240_v7 = vld [vmem:[#allocation5 + $0x8] sm:$0xff]  ;;  %v336_v14 = vld [vmem:[#allocation7] sm:$0x3]  ;;  %vm180_vm14 = vcmask 123904   ;;  %vm672_vm15 = vcmask 1024  }
  0x42   :  { %709 = vmatprep.subr.mxu0 %v244_v3  ;;  %713 = vmatprep.mubr.msk.f32.mxu0 %vm252_vm1, %v239_v5  ;;  %v977_v8 = vld [vmem:[%s1076_s0] sm:$0xff]  ;;  %v982_v9 = vld [vmem:[%s1076_s0 + $0x8] sm:$0xff]  ;;  %v999_v15 = vld [vmem:[%s1076_s0 + $0x18] sm:$0xff]  ;;  %v155_v45 = vand.u32 127, %v154_v40  ;;  %v1023_v47 = vshrl.u32 %v154_v40, 7 }
  0x43   :  { %710 = vmatpush3.msra.mxu0 %v244_v3  ;;  %344 = vperm.xlu0 %762, %v242_v6   ;;  %v104_v10 = vmul.f32 %v977_v8, %v977_v8  ;;  %v241_v11 = vld [vmem:[%s1079_s3] sm:$0xff]  ;;  %v105_v13 = vmul.f32 %v982_v9, %v982_v9  ;;  %v107_v17 = vmul.f32 %v999_v15, %v999_v15  ;;  %v1013_v19 = vld [vmem:[%s1076_s0 + $0x10] sm:$0xff]  ;;  %v586_v40 = vld [vmem:[%s1084_s8 + $0x8] sm:$0xff] }
  0x44   :  { %711 = vmatprep.subr.mxu0 %v243_v4  ;;  %v106_v20 = vmul.f32 %v1013_v19, %v1013_v19  ;;  %v681_v26 = vld [vmem:[#allocation10] ss:$0 sm:$0xff]  ;;  %v160_v51 = vadd.s32 4294967288, %v155_v45  ;;  %v158_v60 = vsub.s32 %v155_v45, %v1023_v47 }
  0x45   :  { %712 = vmatpush3.msra.mxu0 %v243_v4  ;;  %v109_v12 = vsel %vm108_vm2, %v104_v10, 0.0  ;;  %v112_v16 = vsel %vm108_vm2, %v105_v13, 0.0  ;;  %v118_v18 = vsel %vm108_vm2, %v107_v17, 0.0  ;;  %v502_v17 = vld [vmem:[%s1083_s7 + $0x10] sm:$0xff] }
  0x46   :  { %714 = vmatmul.mubr.msk.f32.vlgmr.msra.gmra.mxu0 %vm252_vm1, %v240_v7  ;;  %723 = vmatprep.subr.mxu0 %v892_v2  ;;  %v115_v21 = vsel %vm108_vm2, %v106_v20, 0.0  ;;  %v163_v61 = vsub.s32 %v160_v51, %v1023_v47  ;;  %v103_v7 = vld [vmem:[#allocation3] sm:$0x3] }
  0x47   :  { %724 = vmatpush3.msra.mxu0 %v242_v6  ;;  %727 = vmatprep.mubr.msk.f32.mxu0 %vm893_vm0, %v892_v2  ;;  %vm149_vm13 = vcmp.eq.f32.partialorder %v103_v7, 0.0  ;;  %v500_v20 = vld [vmem:[%s1083_s7] sm:$0xff] }
  0x48   :  { %725 = vmatprep.subr.mxu0 %v892_v2  ;;  %339 = vperm.xlu0 %762, %v241_v11  }
  0x49   :  { %726 = vmatpush3.msra.mxu0 %v241_v11  ;;  %110 = vadd.xlane.f32.xlu1 %v109_v12 }
  0x4a   :  { %728 = vmatmul.mubr.msk.f32.vlgmr.msra.gmra.mxu0 %vm252_vm1, %v336_v14  ;;  %741 = vmatprep.subr.mxu0 %v892_v2 }
  0x4b   :  { %749 = vmatprep.mubr.msk.f32.mxu0 %vm893_vm0, %v892_v2 }
  0x4d   :  { %113 = vadd.xlane.f32.xlu1 %v112_v16  ;;  %v503_v16 = vld [vmem:[%s1083_s7 + $0x18] sm:$0xff] }
  0x51   :  { %119 = vadd.xlane.f32.xlu1 %v118_v18  ;;  %v501_v18 = vld [vmem:[%s1083_s7 + $0x8] sm:$0xff] }
  0x67   :  { %116 = vadd.xlane.f32.xlu0 %v115_v21 }
  0xbe   :  { %v345_v23 = vpop.permute.xlu0 %344 }
  0xc3   :  { %v340_v25 = vpop.permute.xlu0 %339 }
  0xd2   :  { %v111_v22 = vpop.xlane.xlu1 %110 }
  0xd3   :  { %764 = vrsqrt.f32 %v111_v22  ;;  %vm123_vm3 = vcmp.eq.f32.partialorder %v111_v22, inf  ;;  %vm125_vm7 = vcmp.eq.f32.partialorder %v111_v22, 0.0  ;;  %v126_v52 = vand.u32 2147483648, %v111_v22 }
  0xd6   :  { %v114_v24 = vpop.xlane.xlu1 %113 }
  0xd7   :  { %766 = vrsqrt.f32 %v114_v24  ;;  %vm130_vm4 = vcmp.eq.f32.partialorder %v114_v24, inf  ;;  %vm132_vm8 = vcmp.eq.f32.partialorder %v114_v24, 0.0  ;;  %v133_v53 = vand.u32 2147483648, %v114_v24 }
  0xda   :  { %v120_v27 = vpop.xlane.xlu1 %119 }
  0xdb   :  { %768 = vrsqrt.f32 %v120_v27  ;;  %vm144_vm6 = vcmp.eq.f32.partialorder %v120_v27, inf  ;;  %vm146_vm9 = vcmp.eq.f32.partialorder %v120_v27, 0.0  ;;  %v147_v56 = vand.u32 2147483648, %v120_v27 }
  0xe0   :  { %v765_v41 = vpop.eup %764 }
  0xe1   :  { %v122_v46 = vmul.f32 %v765_v41, %v111_v22  ;;  %v585_v41 = vld [vmem:[%s1084_s8] sm:$0xff] }
  0xe3   :  { %v124_v54 = vsel %vm123_vm3, %v111_v22, %v122_v46 }
  0xe4   :  { %v767_v42 = vpop.eup %766  ;;  %v127_v62 = vsel %vm125_vm7, %v126_v52, %v124_v54 }
  0xe5   :  { %v129_v48 = vmul.f32 %v767_v42, %v114_v24  ;;  %v159_v3 = vrot.slane %v127_v62, %v158_v60 }
  0xe7   :  { %v131_v57 = vsel %vm130_vm4, %v114_v24, %v129_v48 }
  0xe8   :  { %v769_v43 = vpop.eup %768  ;;  %v134_v63 = vsel %vm132_vm8, %v133_v53, %v131_v57 }
  0xe9   :  { %v143_v50 = vmul.f32 %v769_v43, %v120_v27  ;;  %v164_v4 = vrot.slane %v134_v63, %v163_v61 }
  0xeb   :  { %v145_v59 = vsel %vm144_vm6, %v120_v27, %v143_v50  ;;  %v166_v10 = vsel %vm165_vm11, %v164_v4, %v159_v3 }
  0xec   :  { %v148_v1 = vsel %vm146_vm9, %v147_v56, %v145_v59 }
  0xed   :  { %v174_v6 = vrot.slane %v148_v1, %v163_v61 }
  0xf0   :  { %v117_v28 = vpop.xlane.xlu0 %116 }
  0xf1   :  { %770 = vrsqrt.f32 %v117_v28  ;;  %vm137_vm5 = vcmp.eq.f32.partialorder %v117_v28, inf  ;;  %v140_v55 = vand.u32 2147483648, %v117_v28  ;;  %vm139_vm10 = vcmp.eq.f32.partialorder %v117_v28, 0.0 }
  0xfe   :  { %v771_v44 = vpop.eup %770 }
  0xff   :  { %v136_v49 = vmul.f32 %v771_v44, %v117_v28 }
 0x101   :  { %v138_v58 = vsel %vm137_vm5, %v117_v28, %v136_v49 }
 0x102   :  { %v141_v0 = vsel %vm139_vm10, %v140_v55, %v138_v58 }
 0x103   :  { %v170_v5 = vrot.slane %v141_v0, %v158_v60 }
 0x105   :  { %v175_v11 = vsel %vm165_vm11, %v174_v6, %v170_v5 }
 0x106   :  { %v715_v29 = vpop.f32.mrf.mxu0  ;;  %v177_v12 = vsel %vm176_vm12, %v175_v11, %v166_v10 }
 0x107   :  { %v331_v30 = vadd.f32 %v715_v29, %v681_v26  ;;  %v179_v13 = vsel %vm149_vm13, -1e+10, %v177_v12 }
 0x108   :  { %v325_v31 = vpop.f32.mrf.mxu0 }
 0x109   :  { %v335_v32 = vmax.f32 %v331_v30, 0.0  ;;  %v326_v33 = vadd.f32 %v681_v26, %v325_v31 }
 0x10a   :  { %v488_v34 = vpop.f32.mrf.mxu0 }
 0x10b   :  { %v334_v35 = vmax.f32 %v326_v33, 0.0  ;;  %v492_v36 = vmax.f32 %v488_v34, 1.0  ;;  %v348_v37 = vmul.f32 %v345_v23, %v335_v32  ;;  %v205_v32 = vsub.s32 1, %v1023_v47 }
 0x10c   :  { %v729_v38 = vpop.f32.mrf.mxu0  ;;  %v194_v33 = vsub.s32 0, %v1023_v47 }
 0x10d   :  { %v347_v39 = vmul.f32 %v340_v25, %v334_v35  ;;  %717 = vmatpush3.msra.mxu1 %v348_v37  ;;  %495 = vperm.xlu1 %763, %v492_v36   ;;  %v588_v38 = vld [vmem:[%s1084_s8 + $0x18] sm:$0xff] }
 0x10e   :  { %718 = vmatprep.subr.mxu1 %v892_v2  ;;  %742 = vmatpush3.msra.mxu0 %v588_v38 }
 0x10f   :  { %719 = vmatpush3.msra.mxu1 %v347_v39  ;;  %v587_v39 = vld [vmem:[%s1084_s8 + $0x10] sm:$0xff]  ;;  %743 = vmatprep.subr.mxu0 %v892_v2 }
 0x110   :  { %721 = vmatmul.mubr.msk.f32.vlgmr.msra.gmra.mxu1 %vm252_vm1, %v336_v14  ;;  %730 = vmatprep.subr.mxu1 %v892_v2  ;;  %v181_v14 = vsel %vm180_vm14, %v179_v13, -inf }
 0x111   :  { %738 = vmatprep.mubr.msk.f32.mxu1 %vm893_vm0, %v892_v2  ;;  %731 = vmatpush3.msra.mxu1 %v503_v16 }
 0x112   :  { %732 = vmatprep.subr.mxu1 %v892_v2  ;;  %744 = vmatpush3.msra.mxu0 %v587_v39 }
 0x113   :  { %733 = vmatpush3.msra.mxu1 %v502_v17  ;;  %745 = vmatprep.subr.mxu0 %v892_v2 }
 0x114   :  { %734 = vmatprep.subr.mxu1 %v892_v2  ;;  %746 = vmatpush3.msra.mxu0 %v586_v40 }
 0x115   :  { %735 = vmatpush3.msra.mxu1 %v501_v18  ;;  %747 = vmatprep.subr.mxu0 %v892_v2 }
 0x116   :  { %736 = vmatprep.subr.mxu1 %v892_v2  ;;  %748 = vmatpush3.msra.mxu0 %v585_v41 }
 0x117   :  { %737 = vmatpush3.msra.mxu1 %v500_v20 }
 0x131   :  { %182 = vmax.xlane.f32.xlu1 %v181_v14 }
 0x188   :  { %v496_v21 = vpop.permute.xlu1 %495 }
 0x1ba   :  { %v183_v22 = vpop.xlane.xlu1 %182 }
 0x1bb   :  { %v184_v23 = vsub.f32 %v179_v13, %v183_v22  ;;  %v687_v13 = vld [vmem:[#allocation2] ss:$0 sm:$0xff] }
 0x1bd   :  { %v185_v24 = vmul.f32 1.442695, %v184_v23 }
 0x1bf   :  { %772 = vpow2.f32 %v185_v24 }
 0x1c0   :  { %774 = vrcp.f32 %v496_v21 }
 0x1cc   :  { %v773_v25 = vpop.eup %772 }
 0x1cd   :  { %v187_v26 = vsel %vm180_vm14, %v773_v25, 0.0  ;;  %v775_v27 = vpop.eup %774 }
 0x1ce   :  { %188 = vadd.xlane.f32.xlu0 %v187_v26 }
 0x1d0   :  { %v418_v28 = vpop.f32.mrf.mxu1 }
 0x1d1   :  { %v499_v29 = vmul.f32 %v775_v27, %v418_v28 }
 0x1d2   :  { %v722_v30 = vpop.f32.mrf.mxu1 }
 0x1d3   :  { %739 = vmatmul.mubr.msk.f32.vlgmr.msra.gmra.mxu1 %vm108_vm2, %v499_v29 }
 0x257   :  { %v189_v31 = vpop.xlane.xlu0 %188 }
 0x258   :  { %776 = vrcp.f32 %v189_v31 }
 0x265   :  { %v777_v34 = vpop.eup %776 }
 0x266   :  { %v191_v35 = vmul.f32 %v777_v34, %v773_v25 }
 0x268   :  { %v206_v36 = vrot.slane %v191_v35, %v205_v32  ;;  %v195_v37 = vrot.slane %v191_v35, %v194_v33 }
 0x26a   :  { %208 = vbcast.lane.b32.xlu0 %v206_v36, 256  ;;  %197 = vbcast.lane.b32.xlu1 %v195_v37, 256 }
 0x26e   :  { %212 = vbcast.lane.b32.xlu0 %v206_v36, 264 }
 0x272   :  { %201 = vbcast.lane.b32.xlu0 %v195_v37, 264 }
 0x293   :  { %v573_v42 = vpop.f32.mrf.mxu1 }
 0x294   :  { %v578_v0 = vrot.slane %v573_v42, 1 }
 0x295   :  { %v740_v43 = vpop.f32.mrf.mxu1 }
 0x2dc   :  { %v209_v44 = vpop.permute.xlu0 %208  ;;  %v198_v46 = vpop.permute.xlu1 %197 }
 0x2dd   :  { %v216_v45 = vmul.f32 %v209_v44, %v1013_v19  ;;  %v214_v50 = vmul.f32 %v198_v46, %v977_v8 }
 0x2df   :  { %v227_v49 = vsel %vm108_vm2, %v216_v45, 0.0  ;;  %v218_v55 = vsel %vm108_vm2, %v214_v50, 0.0 }
 0x2e0   :  { %v213_v47 = vpop.permute.xlu0 %212 }
 0x2e1   :  { %v217_v48 = vmul.f32 %v213_v47, %v999_v15 }
 0x2e3   :  { %v228_v51 = vsel %vm108_vm2, %v217_v48, 0.0 }
 0x2e4   :  { %v229_v52 = vadd.f32 %v228_v51, %v227_v49  ;;  %v202_v53 = vpop.permute.xlu0 %201 }
 0x2e5   :  { %v215_v2 = vmul.f32 %v202_v53, %v982_v9 }
 0x2e6   :  { %v230_v54 = vrot.slane %v229_v52, 4 }
 0x2e7   :  { %v219_v56 = vsel %vm108_vm2, %v215_v2, 0.0 }
 0x2e8   :  { %v231_v19 = vadd.f32 %v230_v54, %v229_v52  ;;  %v220_v57 = vadd.f32 %v219_v56, %v218_v55 }
 0x2ea   :  { %v232_v58 = vrot.slane %v231_v19, 2  ;;  %v221_v59 = vrot.slane %v220_v57, 4 }
 0x2ec   :  { %v233_v15 = vadd.f32 %v232_v58, %v231_v19  ;;  %v222_v60 = vadd.f32 %v221_v59, %v220_v57 }
 0x2ee   :  { %v234_v61 = vrot.slane %v233_v15, 1  ;;  %v223_v62 = vrot.slane %v222_v60, 2 }
 0x2f0   :  { %v235_v8 = vadd.f32 %v234_v61, %v233_v15  ;;  %v224_v63 = vadd.f32 %v223_v62, %v222_v60 }
 0x2f2   :  { %v238_v1 = vmul.f32 0.0625, %v235_v8  ;;  %v225_v3 = vrot.slane %v224_v63, 1 }
 0x2f4   :  { %v226_v4 = vadd.f32 %v225_v3, %v224_v63  ;;  %v582_v9 = vadd.f32 %v578_v0, %v238_v1 }
 0x2f6   :  { %v237_v5 = vmul.f32 0.0625, %v226_v4  ;;  %v584_v6 = vmax.f32 %v582_v9, 0.0 }
 0x2f8   :  { %v581_v7 = vadd.f32 %v573_v42, %v237_v5  ;;  %v598_v11 = vrot.slane %v584_v6, 7 }
 0x2fa   :  { %v583_v10 = vmax.f32 %v581_v7, 0.0 }
 0x2fc   :  { %v599_v12 = vsel %vm176_vm12, %v598_v11, %v583_v10 }
 0x2fd   :  { %750 = vmatmul.mubr.msk.f32.vlgmr.msra.gmra.mxu0 %vm108_vm2, %v599_v12 }
 0x3bd   :  { %v668_v14 = vpop.f32.mrf.mxu0 }
 0x3be   :  { %v669_v16 = vadd.f32 %v687_v13, %v668_v14 }
 0x3bf   :  { %v751_v17 = vpop.f32.mrf.mxu0 }
 0x3c0   :  { %673 = vst.msk [vmem:[%s1086_s10] sm:$0x3] %vm672_vm15, %v669_v16 }
 0x3c1   :  { %678 = vsyncpa [#allocation4], 1 }
 0x3c2   :  { %679 = vsyncpa [#allocation6], 1 }
 0x3c3   :  { %680 = vsyncpa [#allocation9], 1 }

</bundles_post_ra>
